<compile_context>
chip_gen: v5e
topology: v5e:2x2
jax: 0.10.0
libtpu: 0.0.40
codegen_flags: <defaults>
</compile_context>

<pallas_src>
import functools

import jax
import jax.numpy as jnp
import numpy as np
from jax.experimental import pallas as pl
from jax.experimental.pallas import tpu as pltpu

LANE = 128


def _round_up(n, m):
    return -(-n // m) * m


# ---------------------------------------------------------------------------
# Fused MLP kernel: one batch-tile per grid step, all layers in-register.
# ---------------------------------------------------------------------------
def _make_fused_kernel(n_layers, linear_skip):
    def kernel(x_ref, *refs):
        o_ref = refs[-1]
        x = x_ref[...]
        hid = x
        idx = 0
        for _ in range(n_layers):
            w = refs[idx][...]
            b = refs[idx + 1][...]
            idx += 2
            hid = jnp.dot(hid, w, preferred_element_type=jnp.float32) + b
            hid = jnp.maximum(hid, 0.0)
            # TODO(synk): dropout is identity (eval-mode forward only).
        # Final Linear (out_features=1) as VPU multiply + XLU lane reduction;
        # the linear_skip concat is folded in via the split output weight.
        w_hid = refs[idx][...]           # (1, H_pad)
        idx += 1
        out = jnp.sum(hid * w_hid, axis=-1, keepdims=True)
        if linear_skip:
            w_x = refs[idx][...]         # (1, in_size)
            idx += 1
            out = out + jnp.sum(x * w_x, axis=-1, keepdims=True)
        b_out = refs[idx][...]           # (1, 1)
        o_ref[...] = (out + b_out).astype(o_ref.dtype)

    return kernel


# ---------------------------------------------------------------------------
# Parameter construction (PyTorch-equivalent shapes: w stored as W^T).
# ---------------------------------------------------------------------------
def init_params(key, in_size, hidden_sizes, linear_skip):
    sizes = [in_size] + list(hidden_sizes)
    params = {"enc": []}
    for i in range(len(sizes) - 1):
        key, kw, kb = jax.random.split(key, 3)
        bound = 1.0 / float(np.sqrt(sizes[i]))
        w = jax.random.uniform(kw, (sizes[i], sizes[i + 1]), jnp.float32,
                               minval=-bound, maxval=bound)
        b = jax.random.uniform(kb, (1, sizes[i + 1]), jnp.float32,
                               minval=-bound, maxval=bound)
        params["enc"].append((w, b))
    out_in = sizes[-1] + in_size if linear_skip else sizes[-1]
    key, kw, kb = jax.random.split(key, 3)
    bound = 1.0 / float(np.sqrt(out_in))
    params["out_w"] = jax.random.uniform(kw, (out_in, 1), jnp.float32,
                                         minval=-bound, maxval=bound)
    params["out_b"] = jax.random.uniform(kb, (1, 1), jnp.float32,
                                         minval=-bound, maxval=bound)
    return params


def prepare_params(params, in_size, hidden_sizes, linear_skip):
    """One-time host-side prep: lane-pad hidden dims to 128, split out_w."""
    padded = {"enc": []}
    prev_pad = in_size                      # first layer input is raw x width
    for (w, b), h in zip(params["enc"], hidden_sizes):
        h_pad = _round_up(h, LANE)
        w_pad = jnp.zeros((prev_pad, h_pad), jnp.float32)
        w_pad = w_pad.at[: w.shape[0], :h].set(w)
        b_pad = jnp.zeros((1, h_pad), jnp.float32).at[:, :h].set(b)
        padded["enc"].append((w_pad, b_pad))
        prev_pad = h_pad
    H = hidden_sizes[-1]
    h_pad = _round_up(H, LANE)
    out_w = params["out_w"]                 # (H [+ in_size], 1); order [hid, x]
    w_hid = jnp.zeros((1, h_pad), jnp.float32).at[0, :H].set(out_w[:H, 0])
    padded["out_w_hid"] = w_hid
    if linear_skip:
        padded["out_w_x"] = out_w[H:, 0].reshape(1, in_size)
    padded["out_b"] = params["out_b"]
    return padded


# ---------------------------------------------------------------------------
# Forward pass: one fused pallas_call, batch-tiled grid.
# ---------------------------------------------------------------------------
@functools.partial(jax.jit, static_argnames=("linear_skip", "tile_b"))
def eluc_forward(x, padded_params, *, linear_skip, tile_b=512):
    batch, in_f = x.shape
    n_layers = len(padded_params["enc"])

    if batch <= tile_b:
        tile_b = batch                      # single block == full extent
        pb = batch
    else:
        pb = _round_up(batch, tile_b)       # tile_b (512) is a multiple of 8
    x_in = x if pb == batch else jnp.pad(x, ((0, pb - batch), (0, 0)))
    grid = (pb // tile_b,)

    inputs = [x_in]
    in_specs = [pl.BlockSpec((tile_b, in_f), lambda i: (i, 0))]
    for w, b in padded_params["enc"]:
        inputs += [w, b]
        in_specs += [pl.BlockSpec(w.shape, lambda i: (0, 0)),
                     pl.BlockSpec(b.shape, lambda i: (0, 0))]
    inputs.append(padded_params["out_w_hid"])
    in_specs.append(
        pl.BlockSpec(padded_params["out_w_hid"].shape, lambda i: (0, 0)))
    if linear_skip:
        inputs.append(padded_params["out_w_x"])
        in_specs.append(
            pl.BlockSpec(padded_params["out_w_x"].shape, lambda i: (0, 0)))
    inputs.append(padded_params["out_b"])
    in_specs.append(pl.BlockSpec((1, 1), lambda i: (0, 0)))

    # Advisory cost hint for the XLA scheduler.
    flops = 0
    last_h = in_f
    for w, _ in padded_params["enc"]:
        flops += 2 * pb * int(w.shape[0]) * int(w.shape[1])
        last_h = int(w.shape[1])
    flops += 2 * pb * (last_h + (in_f if linear_skip else 0))
    bytes_accessed = int(sum(int(a.size) * a.dtype.itemsize for a in inputs)
                         + pb * 4)
    cost = pl.CostEstimate(flops=flops, transcendentals=0,
                           bytes_accessed=bytes_accessed)

    out = pl.pallas_call(
        _make_fused_kernel(n_layers, linear_skip),
        out_shape=jax.ShapeDtypeStruct((pb, 1), jnp.float32),
        grid=grid,
        in_specs=in_specs,
        out_specs=pl.BlockSpec((tile_b, 1), lambda i: (i, 0)),
        compiler_params=pltpu.CompilerParams(
            dimension_semantics=("parallel",)),
        cost_estimate=cost,
    )(*inputs)
    return out[:batch]


# ---------------------------------------------------------------------------
# Pure-JAX reference (unpadded params), for correctness checking.
# ---------------------------------------------------------------------------
def eluc_forward_ref(x, params, linear_skip):
    hid = x
    for w, b in params["enc"]:
        hid = jnp.maximum(hid @ w + b, 0.0)
    if linear_skip:
        hid = jnp.concatenate([hid, x], axis=1)
    return hid @ params["out_w"] + params["out_b"]


if __name__ == "__main__":
    # Small, module-consistent shapes: batch=8 samples of 16 input features,
    # hidden_sizes=[32, 16], linear_skip=True, dropout=0.1 (inactive at eval).
    batch = 8
    in_size = 16
    hidden_sizes = [32, 16]
    linear_skip = True

    key = jax.random.PRNGKey(0)
    key, kx = jax.random.split(key)
    x = jax.random.normal(kx, (batch, in_size), jnp.float32)

    params = init_params(key, in_size, hidden_sizes, linear_skip)
    padded_params = prepare_params(params, in_size, hidden_sizes, linear_skip)

    out = eluc_forward(x, padded_params, linear_skip=linear_skip)
    jax.block_until_ready(out)
    assert out.shape == (batch, 1), out.shape

    ref = eluc_forward_ref(x, params, linear_skip)
    np.testing.assert_allclose(np.asarray(out), np.asarray(ref),
                               rtol=1e-5, atol=1e-5)
    print("KERNEL_OK")
</pallas_src>

<mosaic_0001>
module attributes {stable_mosaic.version = 11 : i64} {
  func.func @kernel(%arg0: i32, %arg1: memref<8x16xf32, #tpu.memory_space<vmem>>, %arg2: memref<16x128xf32, #tpu.memory_space<vmem>>, %arg3: memref<1x128xf32, #tpu.memory_space<vmem>>, %arg4: memref<128x128xf32, #tpu.memory_space<vmem>>, %arg5: memref<1x128xf32, #tpu.memory_space<vmem>>, %arg6: memref<1x128xf32, #tpu.memory_space<vmem>>, %arg7: memref<1x16xf32, #tpu.memory_space<vmem>>, %arg8: memref<1x1xf32, #tpu.memory_space<vmem>>, %arg9: memref<8x1xf32, #tpu.memory_space<vmem>>) attributes {dimension_semantics = [#tpu.dimension_semantics<parallel>], iteration_bounds = array<i64: 1>, scalar_prefetch = 0 : i64, scratch_operands = 0 : i64, tpu.core_type = #tpu.core_type<tc>, window_params = [{transform_indices = @transform_0, window_bounds = array<i64: 8, 16>}, {pipeline_mode = #tpu.pipeline_mode<synchronous>, transform_indices = @transform_1, window_bounds = array<i64: 16, 128>}, {pipeline_mode = #tpu.pipeline_mode<synchronous>, transform_indices = @transform_2, window_bounds = array<i64: 1, 128>}, {pipeline_mode = #tpu.pipeline_mode<synchronous>, transform_indices = @transform_3, window_bounds = array<i64: 128, 128>}, {pipeline_mode = #tpu.pipeline_mode<synchronous>, transform_indices = @transform_4, window_bounds = array<i64: 1, 128>}, {pipeline_mode = #tpu.pipeline_mode<synchronous>, transform_indices = @transform_5, window_bounds = array<i64: 1, 128>}, {pipeline_mode = #tpu.pipeline_mode<synchronous>, transform_indices = @transform_6, window_bounds = array<i64: 1, 16>}, {pipeline_mode = #tpu.pipeline_mode<synchronous>, transform_indices = @transform_7, window_bounds = array<i64: 1, 1>}, {transform_indices = @transform_8, window_bounds = array<i64: 8, 1>}]} {
    %c0 = arith.constant 0 : index
    %c0_0 = arith.constant 0 : index
    %0 = vector.load %arg1[%c0, %c0_0] : memref<8x16xf32, #tpu.memory_space<vmem>>, vector<8x16xf32>
    %c0_1 = arith.constant 0 : index
    %c0_2 = arith.constant 0 : index
    %1 = vector.load %arg2[%c0_1, %c0_2] : memref<16x128xf32, #tpu.memory_space<vmem>>, vector<16x128xf32>
    %c0_3 = arith.constant 0 : index
    %c0_4 = arith.constant 0 : index
    %2 = vector.load %arg3[%c0_3, %c0_4] : memref<1x128xf32, #tpu.memory_space<vmem>>, vector<1x128xf32>
    %cst = arith.constant dense<0.000000e+00> : vector<8x128xf32>
    %3 = tpu.matmul %0, %1, %cst {dimension_numbers = #tpu.dot_dimension_numbers<[1], [0], [0], [1], [0, 0, 1, 1], [], []>} : vector<8x16xf32>, vector<16x128xf32>, vector<8x128xf32> -> vector<8x128xf32>
    %4 = vector.broadcast %2 : vector<1x128xf32> to vector<8x128xf32>
    %5 = arith.addf %3, %4 : vector<8x128xf32>
    %cst_5 = arith.constant 0.000000e+00 : f32
    %6 = vector.broadcast %cst_5 : f32 to vector<8x128xf32>
    %7 = arith.maximumf %5, %6 : vector<8x128xf32>
    %c0_6 = arith.constant 0 : index
    %c0_7 = arith.constant 0 : index
    %8 = vector.load %arg4[%c0_6, %c0_7] : memref<128x128xf32, #tpu.memory_space<vmem>>, vector<128x128xf32>
    %c0_8 = arith.constant 0 : index
    %c0_9 = arith.constant 0 : index
    %9 = vector.load %arg5[%c0_8, %c0_9] : memref<1x128xf32, #tpu.memory_space<vmem>>, vector<1x128xf32>
    %cst_10 = arith.constant dense<0.000000e+00> : vector<8x128xf32>
    %10 = tpu.matmul %7, %8, %cst_10 {dimension_numbers = #tpu.dot_dimension_numbers<[1], [0], [0], [1], [0, 0, 1, 1], [], []>} : vector<8x128xf32>, vector<128x128xf32>, vector<8x128xf32> -> vector<8x128xf32>
    %11 = vector.broadcast %9 : vector<1x128xf32> to vector<8x128xf32>
    %12 = arith.addf %10, %11 : vector<8x128xf32>
    %cst_11 = arith.constant 0.000000e+00 : f32
    %13 = vector.broadcast %cst_11 : f32 to vector<8x128xf32>
    %14 = arith.maximumf %12, %13 : vector<8x128xf32>
    %c0_12 = arith.constant 0 : index
    %c0_13 = arith.constant 0 : index
    %15 = vector.load %arg6[%c0_12, %c0_13] : memref<1x128xf32, #tpu.memory_space<vmem>>, vector<1x128xf32>
    %16 = vector.broadcast %15 : vector<1x128xf32> to vector<8x128xf32>
    %17 = arith.mulf %14, %16 : vector<8x128xf32>
    %cst_14 = arith.constant dense<0.000000e+00> : vector<8xf32>
    %18 = vector.multi_reduction <add>, %17, %cst_14 [1] : vector<8x128xf32> to vector<8xf32>
    %19 = vector.shape_cast %18 : vector<8xf32> to vector<8x1xf32>
    %c0_15 = arith.constant 0 : index
    %c0_16 = arith.constant 0 : index
    %20 = vector.load %arg7[%c0_15, %c0_16] : memref<1x16xf32, #tpu.memory_space<vmem>>, vector<1x16xf32>
    %21 = vector.broadcast %20 : vector<1x16xf32> to vector<8x16xf32>
    %22 = arith.mulf %0, %21 : vector<8x16xf32>
    %cst_17 = arith.constant dense<0.000000e+00> : vector<8xf32>
    %23 = vector.multi_reduction <add>, %22, %cst_17 [1] : vector<8x16xf32> to vector<8xf32>
    %24 = vector.shape_cast %23 : vector<8xf32> to vector<8x1xf32>
    %25 = arith.addf %19, %24 : vector<8x1xf32>
    %c0_18 = arith.constant 0 : index
    %c0_19 = arith.constant 0 : index
    %26 = vector.load %arg8[%c0_18, %c0_19] : memref<1x1xf32, #tpu.memory_space<vmem>>, vector<1x1xf32>
    %27 = vector.broadcast %26 : vector<1x1xf32> to vector<8x1xf32>
    %28 = arith.addf %25, %27 : vector<8x1xf32>
    %c0_20 = arith.constant 0 : index
    %c0_21 = arith.constant 0 : index
    %29 = vector.load %arg9[%c0_20, %c0_21] : memref<8x1xf32, #tpu.memory_space<vmem>>, vector<8x1xf32>
    tpu.vector_store %arg9[%c0_20, %c0_21], %28 {strides = array<i32>} : memref<8x1xf32, #tpu.memory_space<vmem>>, vector<8x1xf32>,
    return
  }
  func.func @transform_0(%arg0: i32) -> (i32, i32) {
    %c0_i32 = arith.constant 0 : i32
    %c0_i32_0 = arith.constant 0 : i32
    return %arg0, %c0_i32 : i32, i32
  }
  func.func @transform_1(%arg0: i32) -> (i32, i32) {
    %c0_i32 = arith.constant 0 : i32
    %c0_i32_0 = arith.constant 0 : i32
    %c0_i32_1 = arith.constant 0 : i32
    return %c0_i32, %c0_i32_0 : i32, i32
  }
  func.func @transform_2(%arg0: i32) -> (i32, i32) {
    %c0_i32 = arith.constant 0 : i32
    %c0_i32_0 = arith.constant 0 : i32
    %c0_i32_1 = arith.constant 0 : i32
    return %c0_i32, %c0_i32_0 : i32, i32
  }
  func.func @transform_3(%arg0: i32) -> (i32, i32) {
    %c0_i32 = arith.constant 0 : i32
    %c0_i32_0 = arith.constant 0 : i32
    %c0_i32_1 = arith.constant 0 : i32
    return %c0_i32, %c0_i32_0 : i32, i32
  }
  func.func @transform_4(%arg0: i32) -> (i32, i32) {
    %c0_i32 = arith.constant 0 : i32
    %c0_i32_0 = arith.constant 0 : i32
    %c0_i32_1 = arith.constant 0 : i32
    return %c0_i32, %c0_i32_0 : i32, i32
  }
  func.func @transform_5(%arg0: i32) -> (i32, i32) {
    %c0_i32 = arith.constant 0 : i32
    %c0_i32_0 = arith.constant 0 : i32
    %c0_i32_1 = arith.constant 0 : i32
    return %c0_i32, %c0_i32_0 : i32, i32
  }
  func.func @transform_6(%arg0: i32) -> (i32, i32) {
    %c0_i32 = arith.constant 0 : i32
    %c0_i32_0 = arith.constant 0 : i32
    %c0_i32_1 = arith.constant 0 : i32
    return %c0_i32, %c0_i32_0 : i32, i32
  }
  func.func @transform_7(%arg0: i32) -> (i32, i32) {
    %c0_i32 = arith.constant 0 : i32
    %c0_i32_0 = arith.constant 0 : i32
    %c0_i32_1 = arith.constant 0 : i32
    return %c0_i32, %c0_i32_0 : i32, i32
  }
  func.func @transform_8(%arg0: i32) -> (i32, i32) {
    %c0_i32 = arith.constant 0 : i32
    %c0_i32_0 = arith.constant 0 : i32
    return %arg0, %c0_i32 : i32, i32
  }
}

</mosaic_0001>

<bundles_post_ra>
// kernel: eluc_forward.1
= control target key start
LH: loop header
LB: loop body
LE: loop exit
PB: predicated region body
PF: predicated region fallthrough
CT: control target
= control target key end

     0   :  { %s344_s0 = inlined_call_operand.hbm [shape: f32[8,16], index: 0, kind: input, shape index: {}]   ;;  %s345_s1 = inlined_call_operand.hbm [shape: f32[16,128], index: 1, kind: input, shape index: {}]   ;;  %s346_s2 = inlined_call_operand.vmem [shape: f32[1,128], index: 2, kind: input, shape index: {}]   ;;  %s347_s3 = inlined_call_operand.hbm [shape: f32[128,128], index: 3, kind: input, shape index: {}]   ;;  %s348_s4 = inlined_call_operand.vmem [shape: f32[1,128], index: 4, kind: input, shape index: {}]   ;;  %s349_s5 = inlined_call_operand.vmem [shape: f32[1,128], index: 5, kind: input, shape index: {}]   ;;  %s350_s6 = inlined_call_operand.vmem [shape: f32[1,16], index: 6, kind: input, shape index: {}]   ;;  %s351_s7 = inlined_call_operand.<no memory space> [shape: f32[1,1], index: 7, kind: input, shape index: {}]   ;;  %s352_s8 = inlined_call_operand.vmem [shape: f32[8,1], index: 8, kind: output, shape index: {}]  }
   0x1   :  { %v13_v0 = vstv %s351_s7 }
   0x2   :  { %14 = vst [vmem:[#allocation2] sm:$0x1] %v13_v0 }
   0x3   :  { %15 = vsyncpa [#allocation4], 0 }
   0x4   :  { %16 = vsyncpa [#allocation6], 0  ;;  %s32_s9 = sshll.u32 %s345_s1, 4  ;;  %s265_s10 = smov [#allocation5]   ;;  %s33_s9 = int_to_ptr.hbm [resolvable:$true] %s32_s9 }
   0x5   :  { %s34_s11 = sshll.u32 %s265_s10, 4  ;;  %s22_s14 = sshll.u32 %s344_s0, 4  ;;  %s35_s11 = int_to_ptr.vmem [resolvable:$true] %s34_s11  ;;  %s23_s14 = int_to_ptr.hbm [resolvable:$true] %s22_s14 }
   0x6   :  { %s266_s15 = smov 128   ;;  %s267_s16 = smov 8  }
   0x7   :  { %40 = dma.hbm_to_vmem [thread:$0]  %s33_s9, 256, %s35_s11, [#allocation6], %s266_s15, %s266_s15, %s267_s16  }
   0x8   :  { %s268_s7 = smov [#allocation3]   ;;  %s47_s20 = sshll.u32 %s347_s3, 4  ;;  %s48_s20 = int_to_ptr.hbm [resolvable:$true] %s47_s20 }
   0x9   :  { %s24_s17 = sshll.u32 %s268_s7, 4  ;;  %s269_s1 = smov [#allocation7]   ;;  %s25_s17 = int_to_ptr.vmem [resolvable:$true] %s24_s17 }
   0xa   :  { %27 = dma.hbm_to_vmem [thread:$0]  %s23_s14, 128, %s25_s17, [#allocation4]  }
   0xb   :  { %s49_s21 = sshll.u32 %s269_s1, 4  ;;  %s50_s21 = int_to_ptr.vmem [resolvable:$true] %s49_s21 }
   0xc   :  { %55 = dma.hbm_to_vmem [thread:$0]  %s48_s20, 2048, %s50_s21, [#allocation6], %s266_s15, %s266_s15, %s267_s16  }
   0xd   :  { %261 = dma.done.wait [#allocation4], 128  }
   0xe   :  { %262 = vsyncadd [#allocation4], 4294967168 }
   0xf   :  { %263 = dma.done.wait [#allocation6], 2304  }
  0x10   :  { %264 = vsyncadd [#allocation6], 4294964992  ;;  %v78_v1 = vld [vmem:[#allocation5 + $0x8] sm:$0xff]  ;;  %v77_v2 = vld [vmem:[#allocation5] sm:$0xff]  ;;  %vm83_vm0 = vcmask 130048   ;;  %vm170_vm1 = vcmask 7168  }
  0x11   :  { %101 = vmatpush.msra.mxu0 %v78_v1  ;;  %v76_v3 = vld [vmem:[#allocation3] sm:$0xff]  ;;  %v123_v4 = vld [vmem:[#allocation7 + $0x78] sm:$0xff]  ;;  %v122_v5 = vld [vmem:[#allocation7 + $0x70] sm:$0xff] }
  0x12   :  { %128 = vmatpush.msra.mxu1 %v123_v4  ;;  %v121_v6 = vld [vmem:[#allocation7 + $0x68] sm:$0xff]  ;;  %v120_v7 = vld [vmem:[#allocation7 + $0x60] sm:$0xff]  ;;  %v119_v8 = vld [vmem:[#allocation7 + $0x58] sm:$0xff] }
  0x13   :  { %102 = vmatpush.msra.mxu0 %v77_v2  ;;  %v118_v9 = vld [vmem:[#allocation7 + $0x50] sm:$0xff]  ;;  %v117_v10 = vld [vmem:[#allocation7 + $0x48] sm:$0xff]  ;;  %v116_v11 = vld [vmem:[#allocation7 + $0x40] sm:$0xff] }
  0x14   :  { %178 = vmatmul.msk.f32.vlgmr.msra.gmra.mxu0 %vm83_vm0, %v76_v3  ;;  %129 = vmatpush.msra.mxu1 %v122_v5  ;;  %v115_v12 = vld [vmem:[#allocation7 + $0x38] sm:$0xff]  ;;  %v114_v13 = vld [vmem:[#allocation7 + $0x30] sm:$0xff]  ;;  %v113_v14 = vld [vmem:[#allocation7 + $0x28] sm:$0xff] }
  0x15   :  { %v112_v15 = vld [vmem:[#allocation7 + $0x20] sm:$0xff]  ;;  %v111_v16 = vld [vmem:[#allocation7 + $0x18] sm:$0xff]  ;;  %v110_v17 = vld [vmem:[#allocation7 + $0x10] sm:$0xff] }
  0x16   :  { %130 = vmatpush.msra.mxu1 %v121_v6  ;;  %v109_v18 = vld [vmem:[#allocation7 + $0x8] sm:$0xff]  ;;  %v108_v19 = vld [vmem:[#allocation7] sm:$0xff] }
  0x17   :  { %v184_v20 = vld [vmem:[%s346_s2] ss:$0 sm:$0xff] }
  0x18   :  { %131 = vmatpush.msra.mxu1 %v120_v7  ;;  %v185_v24 = vld [vmem:[%s348_s4] ss:$0 sm:$0xff] }
  0x19   :  { %v186_v27 = vld [vmem:[%s349_s5] ss:$0 sm:$0xff] }
  0x1a   :  { %132 = vmatpush.msra.mxu1 %v119_v8  ;;  %v187_v29 = vld [vmem:[%s350_s6] ss:$0 sm:$0xff] }
  0x1b   :  { %v160_v31 = vmul.f32 %v187_v29, %v76_v3  ;;  %v188_v34 = vld [vmem:[#allocation2] ss:$0 sm:$0xff] }
  0x1c   :  { %133 = vmatpush.msra.mxu1 %v118_v9 }
  0x1d   :  { %v161_v32 = vsel %vm83_vm0, %v160_v31, 0.0 }
  0x1e   :  { %134 = vmatpush.msra.mxu1 %v117_v10 }
  0x20   :  { %135 = vmatpush.msra.mxu1 %v116_v11 }
  0x22   :  { %136 = vmatpush.msra.mxu1 %v115_v12 }
  0x24   :  { %137 = vmatpush.msra.mxu1 %v114_v13 }
  0x26   :  { %138 = vmatpush.msra.mxu1 %v113_v14 }
  0x28   :  { %139 = vmatpush.msra.mxu1 %v112_v15 }
  0x2a   :  { %140 = vmatpush.msra.mxu1 %v111_v16 }
  0x2c   :  { %141 = vmatpush.msra.mxu1 %v110_v17 }
  0x2e   :  { %142 = vmatpush.msra.mxu1 %v109_v18 }
  0x30   :  { %143 = vmatpush.msra.mxu1 %v108_v19 }
  0x91   :  { %v104_v21 = vpop.f32.mrf.mxu0 }
  0x92   :  { %v105_v22 = vadd.f32 %v184_v20, %v104_v21 }
  0x94   :  { %v107_v23 = vmax.f32 %v105_v22, 0.0 }
  0x96   :  { %144 = vmatmul.f32.vlgmr.msra.gmra.mxu1 %v107_v23 }
 0x113   :  { %v145_v25 = vpop.f32.mrf.mxu1 }
 0x114   :  { %v146_v26 = vadd.f32 %v185_v24, %v145_v25 }
 0x116   :  { %v148_v28 = vmax.f32 %v146_v26, 0.0 }
 0x118   :  { %v153_v30 = vmul.f32 %v186_v27, %v148_v28 }
 0x11a   :  { %154 = vadd.xlane.f32.xlu0 %v153_v30 }
 0x122   :  { %162 = vadd.xlane.f32.xlu0 %v161_v32 }
 0x18d   :  { %v155_v33 = vpop.xlane.xlu0 %154 }
 0x195   :  { %v163_v35 = vpop.xlane.xlu0 %162 }
 0x196   :  { %v164_v36 = vadd.f32 %v163_v35, %v155_v33 }
 0x198   :  { %v169_v37 = vadd.f32 %v188_v34, %v164_v36 }
 0x19a   :  { %171 = vst.msk [vmem:[%s352_s8] sm:$0xff] %vm170_vm1, %v169_v37 }
 0x19b   :  { %176 = vsyncpa [#allocation4], 1 }
 0x19c   :  { %177 = vsyncpa [#allocation6], 1 }

</bundles_post_ra>
